<compile_context>
chip_gen: v6e
topology: v6e:2x2x1
jax: 0.10.0
libtpu: 0.0.40
codegen_flags: <defaults>
</compile_context>

<pallas_src>
import math

import jax
import jax.numpy as jnp
from jax.experimental import pallas as pl
from jax.experimental.pallas import tpu as pltpu


# --------------------------------------------------------------------------- #
# Kernels
# --------------------------------------------------------------------------- #
def _drop_path_kernel(x_ref, scale_ref, o_ref):
    # x_ref: (TB, TL) activations; scale_ref: (TB, 1) per-sample scale
    # (0 or 1/keep_prob), f32, broadcast across the lane axis.
    o_ref[...] = (x_ref[...].astype(jnp.float32) * scale_ref[...]).astype(o_ref.dtype)


def _drop_path_add_kernel(short_ref, x_ref, scale_ref, o_ref):
    # Fused residual: o = shortcut + x * scale (one pass over the tensors).
    y = x_ref[...].astype(jnp.float32) * scale_ref[...]
    o_ref[...] = (short_ref[...].astype(jnp.float32) + y).astype(o_ref.dtype)


# --------------------------------------------------------------------------- #
# Tiling helpers
# --------------------------------------------------------------------------- #
def _sublane_align(dtype) -> int:
    """Sublane packing granularity: 8 (f32), 16 (bf16/f16), 32 (int8/fp8)."""
    return max(8, 32 // jnp.dtype(dtype).itemsize)


def _fold_factor(B: int, L: int, align: int) -> int:
    """Smallest r with (B*r) % align == 0 and L % r == 0.

    Folds features into the sublane axis so tiny batches (B < align) don't
    waste most of every vreg / VMEM tile on padding. Returns 1 if no fold
    exists or none is needed.
    """
    if B >= align:
        return 1
    need = align // math.gcd(B, align)
    r = need
    while r <= L:
        if L % r == 0:
            return r
        r += need
    return 1


def _tiles_and_grid(B: int, L: int, itemsize: int, align: int, target_bytes: int):
    """Pick (TB, TL, grid) with TB*TL*itemsize ~= target_bytes, lane-dense tiles."""
    # Lane tile: multiple of 128 (or full L), capped so a minimal-TB block
    # (align rows) still fits the byte budget.
    if L <= 128:
        TL = L
    else:
        max_tl = max(128, (target_bytes // (itemsize * align)) // 128 * 128)
        TL = L if L <= max_tl else max_tl
    # Sublane tile: fill the rest of the budget (multiple of align, or full B).
    rows = max(1, target_bytes // (TL * itemsize))
    TB = B if B <= rows else max(align, (rows // align) * align)

    gb, gl = pl.cdiv(B, TB), pl.cdiv(L, TL)
    # v7x megacore: if B collapses to a single tile, keep the L-tile count even
    # so the two TensorCores get a balanced split of the parallel grid.
    if gb == 1 and gl > 1 and gl % 2 == 1 and TL > 128:
        tl_even = -(-L // (gl + 1))
        tl_even = max(128, -(-tl_even // 128) * 128)
        if tl_even < TL:
            TL = tl_even
            gl = pl.cdiv(L, TL)
    return TB, TL, (gb, gl)


def _make_scale(key, B: int, drop_prob: float):
    """Per-sample scale in {0, 1/keep_prob}, f32 (same math as the reference)."""
    keep = 1.0 - drop_prob
    u = jax.random.uniform(key, (B, 1), dtype=jnp.float32)
    return jnp.floor(keep + u) / keep


# --------------------------------------------------------------------------- #
# Public wrappers
# --------------------------------------------------------------------------- #
def drop_path_pallas(x, key, drop_prob: float = 0.0, training: bool = False,
                     *, donate_x: bool = False):
    """Stochastic depth. x: (B, ...). Returns array of same shape/dtype."""
    if drop_prob == 0.0 or not training:
        return x  # identity short-circuit, same as the PyTorch module
    assert jnp.issubdtype(x.dtype, jnp.floating), "DropPath expects float activations"

    orig_shape = x.shape
    B = x.shape[0]
    L = math.prod(x.shape[1:])
    scale = _make_scale(key, B, drop_prob)

    align = _sublane_align(x.dtype)
    r = _fold_factor(B, L, align)            # fold features into sublanes for tiny B
    Bf, Lf = B * r, L // r
    x2 = x.reshape(Bf, Lf)                   # free reshape (row-major)
    if r > 1:
        scale = jnp.repeat(scale, r, axis=0)  # each folded row keeps its sample's scale

    itemsize = jnp.dtype(x.dtype).itemsize
    TB, TL, grid = _tiles_and_grid(Bf, Lf, itemsize, align, target_bytes=8 << 20)

    cost = pl.CostEstimate(flops=B * L, transcendentals=0,
                           bytes_accessed=2 * B * L * itemsize + Bf * 4)

    out = pl.pallas_call(
        _drop_path_kernel,
        out_shape=jax.ShapeDtypeStruct((Bf, Lf), x.dtype),
        grid_spec=pltpu.PrefetchScalarGridSpec(
            num_scalar_prefetch=0,
            grid=grid,
            in_specs=[
                pl.BlockSpec((TB, TL), lambda i, j: (i, j)),
                pl.BlockSpec((TB, 1), lambda i, j: (i, 0)),   # revisited across j
            ],
            out_specs=pl.BlockSpec((TB, TL), lambda i, j: (i, j)),
        ),
        compiler_params=pltpu.CompilerParams(
            dimension_semantics=("parallel", "parallel"),
            vmem_limit_bytes=48 << 20),
        cost_estimate=cost,
        input_output_aliases={0: 0} if donate_x else {},
    )(x2, scale)

    return out.reshape(orig_shape)


def drop_path_add_pallas(shortcut, x, key, drop_prob: float = 0.0,
                         training: bool = False, *, donate_shortcut: bool = False):
    """Fused residual: shortcut + drop_path(x). Both inputs share shape/dtype."""
    assert shortcut.shape == x.shape and shortcut.dtype == x.dtype
    if drop_prob == 0.0 or not training:
        return shortcut + x
    assert jnp.issubdtype(x.dtype, jnp.floating), "DropPath expects float activations"

    orig_shape = x.shape
    B = x.shape[0]
    L = math.prod(x.shape[1:])
    scale = _make_scale(key, B, drop_prob)

    align = _sublane_align(x.dtype)
    r = _fold_factor(B, L, align)
    Bf, Lf = B * r, L // r
    s2 = shortcut.reshape(Bf, Lf)
    x2 = x.reshape(Bf, Lf)
    if r > 1:
        scale = jnp.repeat(scale, r, axis=0)

    itemsize = jnp.dtype(x.dtype).itemsize
    # 3 big streams (2 in + 1 out) instead of 2 -> slightly smaller block budget.
    TB, TL, grid = _tiles_and_grid(Bf, Lf, itemsize, align, target_bytes=6 << 20)

    cost = pl.CostEstimate(flops=2 * B * L, transcendentals=0,
                           bytes_accessed=3 * B * L * itemsize + Bf * 4)

    out = pl.pallas_call(
        _drop_path_add_kernel,
        out_shape=jax.ShapeDtypeStruct((Bf, Lf), x.dtype),
        grid_spec=pltpu.PrefetchScalarGridSpec(
            num_scalar_prefetch=0,
            grid=grid,
            in_specs=[
                pl.BlockSpec((TB, TL), lambda i, j: (i, j)),
                pl.BlockSpec((TB, TL), lambda i, j: (i, j)),
                pl.BlockSpec((TB, 1), lambda i, j: (i, 0)),
            ],
            out_specs=pl.BlockSpec((TB, TL), lambda i, j: (i, j)),
        ),
        compiler_params=pltpu.CompilerParams(
            dimension_semantics=("parallel", "parallel"),
            vmem_limit_bytes=48 << 20),
        cost_estimate=cost,
        input_output_aliases={0: 0} if donate_shortcut else {},
    )(s2, x2, scale)

    return out.reshape(orig_shape)


# --------------------------------------------------------------------------- #
# Self-test
# --------------------------------------------------------------------------- #
if __name__ == "__main__":
    key = jax.random.PRNGKey(0)
    kx, kmask, kx2, kmask2, ks = jax.random.split(key, 5)

    # Small ViT-like residual-branch activation: batch=2, tokens=8, hidden=32.
    B, N, D = 2, 8, 32
    drop_prob = 0.25
    x = jax.random.normal(kx, (B, N, D), dtype=jnp.float32)

    out = jax.block_until_ready(drop_path_pallas(x, kmask, drop_prob, True))
    assert out.shape == x.shape and out.dtype == x.dtype

    # Reference: same math in plain JAX with the same per-sample mask draw.
    keep = 1.0 - drop_prob
    u = jax.random.uniform(kmask, (B, 1), dtype=jnp.float32)
    scale_ref = jnp.floor(keep + u) / keep
    ref = x * scale_ref.reshape(B, 1, 1)
    assert jnp.allclose(out, ref, atol=1e-6, rtol=1e-6)

    # Eval mode / drop_prob=0 -> identity (no kernel launch).
    assert jnp.array_equal(drop_path_pallas(x, kmask, drop_prob, False), x)
    assert jnp.array_equal(drop_path_pallas(x, kmask, 0.0, True), x)

    # bf16 input: exercises dtype-aware sublane alignment (16) and bf16 store path.
    B2, N2, D2 = 16, 64, 128
    x2 = jax.random.normal(kx2, (B2, N2, D2), dtype=jnp.bfloat16)
    out2 = jax.block_until_ready(drop_path_pallas(x2, kmask2, 0.5, True))
    u2 = jax.random.uniform(kmask2, (B2, 1), dtype=jnp.float32)
    s2 = jnp.floor(0.5 + u2) / 0.5
    ref2 = (x2.astype(jnp.float32) * s2.reshape(B2, 1, 1)).astype(jnp.bfloat16)
    assert out2.dtype == jnp.bfloat16
    assert jnp.allclose(out2.astype(jnp.float32), ref2.astype(jnp.float32),
                        atol=1e-2, rtol=1e-2)

    # Fused residual variant: o = shortcut + drop_path(x), same mask draw.
    shortcut = jax.random.normal(ks, (B, N, D), dtype=jnp.float32)
    out3 = jax.block_until_ready(
        drop_path_add_pallas(shortcut, x, kmask, drop_prob, True))
    ref3 = shortcut + ref
    assert jnp.allclose(out3, ref3, atol=1e-6, rtol=1e-6)

    print("KERNEL_OK")
</pallas_src>

<mosaic_0001>
module attributes {stable_mosaic.version = 11 : i64} {
  func.func @_drop_path_kernel(%arg0: i32, %arg1: i32, %arg2: memref<8x64xf32, #tpu.memory_space<vmem>>, %arg3: memref<8x1xf32, #tpu.memory_space<vmem>>, %arg4: memref<8x64xf32, #tpu.memory_space<vmem>>) attributes {dimension_semantics = [#tpu.dimension_semantics<parallel>, #tpu.dimension_semantics<parallel>], iteration_bounds = array<i64: 1, 1>, scalar_prefetch = 0 : i64, scratch_operands = 0 : i64, tpu.core_type = #tpu.core_type<tc>, window_params = [{transform_indices = @transform_0, window_bounds = array<i64: 8, 64>}, {transform_indices = @transform_1, window_bounds = array<i64: 8, 1>}, {transform_indices = @transform_2, window_bounds = array<i64: 8, 64>}]} {
    %c0 = arith.constant 0 : index
    %c0_0 = arith.constant 0 : index
    %0 = vector.load %arg2[%c0, %c0_0] : memref<8x64xf32, #tpu.memory_space<vmem>>, vector<8x64xf32>
    %c0_1 = arith.constant 0 : index
    %c0_2 = arith.constant 0 : index
    %1 = vector.load %arg3[%c0_1, %c0_2] : memref<8x1xf32, #tpu.memory_space<vmem>>, vector<8x1xf32>
    %2 = vector.broadcast %1 : vector<8x1xf32> to vector<8x64xf32>
    %3 = arith.mulf %0, %2 : vector<8x64xf32>
    %c0_3 = arith.constant 0 : index
    %c0_4 = arith.constant 0 : index
    %4 = vector.load %arg4[%c0_3, %c0_4] : memref<8x64xf32, #tpu.memory_space<vmem>>, vector<8x64xf32>
    tpu.vector_store %arg4[%c0_3, %c0_4], %3 {strides = array<i32>} : memref<8x64xf32, #tpu.memory_space<vmem>>, vector<8x64xf32>,
    return
  }
  func.func @transform_0(%arg0: i32, %arg1: i32) -> (i32, i32) {
    %c0_i32 = arith.constant 0 : i32
    return %arg0, %arg1 : i32, i32
  }
  func.func @transform_1(%arg0: i32, %arg1: i32) -> (i32, i32) {
    %c0_i32 = arith.constant 0 : i32
    %c0_i32_0 = arith.constant 0 : i32
    return %arg0, %c0_i32 : i32, i32
  }
  func.func @transform_2(%arg0: i32, %arg1: i32) -> (i32, i32) {
    %c0_i32 = arith.constant 0 : i32
    return %arg0, %arg1 : i32, i32
  }
}

</mosaic_0001>

<bundles_post_ra>
// kernel: tpu_custom_call.1
= control target key start
LH: loop header
LB: loop body
LE: loop exit
PB: predicated region body
PF: predicated region fallthrough
CT: control target
= control target key end

     0   :  { %s87_s0 = inlined_call_operand.vmem [shape: f32[8,64], index: 0, kind: input, shape index: {}]   ;;  %s88_s1 = inlined_call_operand.vmem [shape: f32[8,1], index: 1, kind: input, shape index: {}]   ;;  %s89_s2 = inlined_call_operand.hbm [shape: f32[8,64], index: 2, kind: output, shape index: {}]  }
   0x1   :  { %v13_v0 = vld [vmem:[%s88_s1] sm:$0xff] }
   0x2   :  { %7 = vsyncpa [#allocation3], 0  ;;  %v61_v1 = vmov 0   ;;  %v12_v2 = vld [vmem:[%s87_s0] sm:$0xff]  ;;  %s62_s13 = smov [#allocation2]   ;;  %vm20_vm0 = vcmask 523264  }
   0x3   :  { %38 = vset.pattern.permute.xlu0 %v61_v1  ;;  %s28_s14 = sshll.u32 %s62_s13, 4  ;;  %s29_s14 = int_to_ptr.vmem [resolvable:$true] %s28_s14 }
   0x4   :  { %16 = vperm.xlu0 %38, %v13_v0   ;;  %s39_s15 = scalar_lea.vmem %s29_s14, 128  ;;  %p44_p1 = scmp.lt.s32.totalorder %s29_s14, %s29_s14 }
   0x5   :  { %p40_p0 = scmp.ne.s32.totalorder %s29_s14, %s39_s15  ;;  %p45_p2 = scmp.lt.s32.totalorder %s39_s15, %s39_s15 }
   0x7   :  { %p46_p3 = por %p45_p2, %p44_p1 }
   0x9   :  { %p47_p4 = pnand %p46_p3, %p40_p0 }
  0x7f   :  { %v17_v3 = vpop.permute.xlu0 %16 }
  0x80   :  { %v19_v4 = vmul.f32 %v17_v3, %v12_v2 }
  0x82   :  { %21 = vst.msk [vmem:[#allocation2] sm:$0xff] %vm20_vm0, %v19_v4 }
  0x83   :  { %50 = shalt.err (!%p47_p4)
}
  0x84   :  { %31 = dma.vmem_to_hbm [thread:$0]  %s29_s14, 128, %s89_s2, [#allocation3]  }
  0x85   :  { %59 = dma.done.wait [#allocation3], 128  }
  0x86   :  { %60 = vsyncadd [#allocation3], 4294967168 }
  0x87   :  { %35 = vsyncpa [#allocation3], 1 }

</bundles_post_ra>
